<compile_context>
chip_gen: v7x
topology: tpu7x:2x2x1
jax: 0.10.0
libtpu: 0.0.40
codegen_flags: <defaults>
</compile_context>

<pallas_src>
import jax
import jax.numpy as jnp
from jax.experimental import pallas as pl
from jax.experimental.pallas import tpu as pltpu


def _proxy_head_kernel(x_ref, w_ref, b_ref, o_ref):
    # Linear: y = x @ W_t + b  (W_t is (in_dim, out_dim)), f32 accumulation.
    y = jnp.dot(x_ref[...], w_ref[...], preferred_element_type=jnp.float32)
    y = y + b_ref[...].astype(jnp.float32)          # (bm, out_dim) + (1, out_dim)

    # F.normalize(p=2, dim=1, eps=1e-12):
    #   x / max(||x||, 1e-12)  ==  x * rsqrt(max(||x||^2, 1e-24))
    sq = jnp.sum(y * y, axis=-1, keepdims=True)     # per-row reduce (lane axis)
    inv = jax.lax.rsqrt(jnp.maximum(sq, 1e-24))     # EUP rsqrt, VPU multiply
    o_ref[...] = (y * inv).astype(o_ref.dtype)


def _round_up(v, m):
    return ((v + m - 1) // m) * m


def _num_tensorcores():
    """Best-effort TensorCore-per-chip count (1 on v5e/v6e, 2 on v7x)."""
    try:
        info = pltpu.get_tpu_info()
        for attr in ("num_cores", "num_tensorcores", "tensorcores_per_chip",
                     "core_count"):
            v = getattr(info, attr, None)
            if isinstance(v, int) and v > 0:
                return v
    except Exception:
        pass
    try:
        kind = jax.devices()[0].device_kind.lower()
        if "v7" in kind:
            return 2
    except Exception:
        pass
    return 1


def proxy_head_forward(x, weight_t, bias, *, block_m=4096, out_dtype=None):
    """ProxyHead forward: L2-normalized Linear.

    Args:
      x:        (N, in_dim) activations (f32 or bf16).
      weight_t: (in_dim, out_dim) — nn.Linear weight, already transposed
                (store it in this layout once; do NOT transpose per call).
      bias:     (out_dim,) bias.
      block_m:  max row tile size (rows per grid step).
      out_dtype: output dtype. Defaults to x.dtype (PyTorch parity);
                 jnp.bfloat16 is the recommended fast path (halves the
                 dominant HBM-write stream, math stays f32).
    """
    N, in_dim = x.shape
    out_dim = weight_t.shape[1]
    out_dtype = jnp.dtype(x.dtype if out_dtype is None else out_dtype)

    # --- choose row tile ---------------------------------------------------
    ncores = _num_tensorcores()
    bm = min(block_m, _round_up(N, 8))              # no bigger than needed
    if ncores >= 2:
        # Keep >= 2 pipelined grid steps per TensorCore when N allows.
        min_steps = 2 * ncores
        if N >= min_steps * 8:
            bm = min(bm, _round_up(pl.cdiv(N, min_steps), 8))
    bm = max(8, _round_up(bm, 8))                   # multiple of 8 sublanes
    grid_m = pl.cdiv(N, bm)                         # ragged last block is OK

    # --- scheduler hint ------------------------------------------------------
    cost = pl.CostEstimate(
        flops=2 * N * in_dim * out_dim + 4 * N * out_dim,
        transcendentals=N,                           # one rsqrt per row
        bytes_accessed=(x.size * x.dtype.itemsize
                        + weight_t.size * weight_t.dtype.itemsize
                        + bias.size * bias.dtype.itemsize
                        + N * out_dim * out_dtype.itemsize),
    )

    b2 = bias.reshape(1, out_dim)                   # (1, out_dim)

    return pl.pallas_call(
        _proxy_head_kernel,
        out_shape=jax.ShapeDtypeStruct((N, out_dim), out_dtype),
        grid_spec=pl.GridSpec(
            grid=(grid_m,),
            in_specs=[
                pl.BlockSpec((bm, in_dim), lambda i: (i, 0)),        # x tile
                pl.BlockSpec((in_dim, out_dim), lambda i: (0, 0)),   # W_t (resident)
                pl.BlockSpec((1, out_dim), lambda i: (0, 0)),        # bias (resident)
            ],
            out_specs=pl.BlockSpec((bm, out_dim), lambda i: (i, 0)),
        ),
        compiler_params=pltpu.CompilerParams(
            dimension_semantics=("parallel",),
        ),
        cost_estimate=cost,
    )(x, weight_t, b2)


def _reference(x, weight_t, bias):
    y = x.astype(jnp.float32) @ weight_t.astype(jnp.float32) + bias
    n = jnp.sqrt(jnp.sum(y * y, axis=1, keepdims=True))
    return y / jnp.maximum(n, 1e-12)


if __name__ == "__main__":
    # Small shapes consistent with the module: batch=8, in_dim=32, out_dim=128.
    key = jax.random.PRNGKey(0)
    k_x, k_w, k_b = jax.random.split(key, 3)

    N, in_dim, out_dim = 8, 32, 128

    # Deterministic parameter init (mimics nn.Linear default uniform init).
    bound = 1.0 / jnp.sqrt(in_dim)
    weight = jax.random.uniform(k_w, (out_dim, in_dim), jnp.float32, -bound, bound)
    bias = jax.random.uniform(k_b, (out_dim,), jnp.float32, -bound, bound)
    x = jax.random.normal(k_x, (N, in_dim), jnp.float32)

    # Hoisted once (store W pre-transposed as the parameter in practice).
    weight_t = weight.T                              # (in_dim, out_dim)

    # 1) f32 parity with the PyTorch module.
    out = jax.block_until_ready(proxy_head_forward(x, weight_t, bias))
    ref = _reference(x, weight_t, bias)
    assert out.shape == (N, out_dim)
    assert jnp.allclose(out, ref, atol=1e-5, rtol=1e-5), "mismatch vs reference"

    # 2) Ragged batch (not a multiple of 8 / the tile): exercises the
    #    partial-boundary-block read-pad / write-clip path (no jnp.pad).
    N2 = 13
    x2 = jax.random.normal(jax.random.PRNGKey(1), (N2, in_dim), jnp.float32)
    out2 = jax.block_until_ready(proxy_head_forward(x2, weight_t, bias))
    ref2 = _reference(x2, weight_t, bias)
    assert out2.shape == (N2, out_dim)
    assert jnp.allclose(out2, ref2, atol=1e-5, rtol=1e-5), "ragged mismatch"
    assert not jnp.any(jnp.isnan(out2)), "NaN leaked from clipped boundary block"

    # 3) Multiple grid steps + ragged last step (force a small tile).
    N3 = 1000
    x3 = jax.random.normal(jax.random.PRNGKey(2), (N3, in_dim), jnp.float32)
    out3 = jax.block_until_ready(
        proxy_head_forward(x3, weight_t, bias, block_m=256))
    ref3 = _reference(x3, weight_t, bias)
    assert out3.shape == (N3, out_dim)
    assert jnp.allclose(out3, ref3, atol=1e-5, rtol=1e-5), "multi-step mismatch"

    # 4) bf16-output fast path (halves the dominant HBM write stream).
    out4 = jax.block_until_ready(
        proxy_head_forward(x2, weight_t, bias, out_dtype=jnp.bfloat16))
    assert out4.dtype == jnp.bfloat16
    assert jnp.allclose(out4.astype(jnp.float32), ref2, atol=2e-2, rtol=2e-2), \
        "bf16 fast-path mismatch"

    # TODO(synk): fit()/ContrastiveLoss/Adam step are training-time machinery,
    # not part of the forward pass; not implemented in the kernel.
    print("KERNEL_OK")
</pallas_src>

<mosaic_0001>
module attributes {stable_mosaic.version = 11 : i64} {
  func.func @_proxy_head_kernel(%arg0: i32, %arg1: memref<8x32xf32, #tpu.memory_space<vmem>>, %arg2: memref<32x128xf32, #tpu.memory_space<vmem>>, %arg3: memref<1x128xf32, #tpu.memory_space<vmem>>, %arg4: memref<8x128xf32, #tpu.memory_space<vmem>>) attributes {dimension_semantics = [#tpu.dimension_semantics<parallel>], iteration_bounds = array<i64: 1>, scalar_prefetch = 0 : i64, scratch_operands = 0 : i64, tpu.core_type = #tpu.core_type<tc>, window_params = [{transform_indices = @transform_0, window_bounds = array<i64: 8, 32>}, {pipeline_mode = #tpu.pipeline_mode<synchronous>, transform_indices = @transform_1, window_bounds = array<i64: 32, 128>}, {pipeline_mode = #tpu.pipeline_mode<synchronous>, transform_indices = @transform_2, window_bounds = array<i64: 1, 128>}, {transform_indices = @transform_3, window_bounds = array<i64: 8, 128>}]} {
    %c0 = arith.constant 0 : index
    %c0_0 = arith.constant 0 : index
    %0 = vector.load %arg1[%c0, %c0_0] : memref<8x32xf32, #tpu.memory_space<vmem>>, vector<8x32xf32>
    %c0_1 = arith.constant 0 : index
    %c0_2 = arith.constant 0 : index
    %1 = vector.load %arg2[%c0_1, %c0_2] : memref<32x128xf32, #tpu.memory_space<vmem>>, vector<32x128xf32>
    %cst = arith.constant dense<0.000000e+00> : vector<8x128xf32>
    %2 = tpu.matmul %0, %1, %cst {dimension_numbers = #tpu.dot_dimension_numbers<[1], [0], [0], [1], [0, 0, 1, 1], [], []>} : vector<8x32xf32>, vector<32x128xf32>, vector<8x128xf32> -> vector<8x128xf32>
    %c0_3 = arith.constant 0 : index
    %c0_4 = arith.constant 0 : index
    %3 = vector.load %arg3[%c0_3, %c0_4] : memref<1x128xf32, #tpu.memory_space<vmem>>, vector<1x128xf32>
    %4 = vector.broadcast %3 : vector<1x128xf32> to vector<8x128xf32>
    %5 = arith.addf %2, %4 : vector<8x128xf32>
    %6 = arith.mulf %5, %5 : vector<8x128xf32>
    %cst_5 = arith.constant dense<0.000000e+00> : vector<8xf32>
    %7 = vector.multi_reduction <add>, %6, %cst_5 [1] : vector<8x128xf32> to vector<8xf32>
    %8 = vector.shape_cast %7 : vector<8xf32> to vector<8x1xf32>
    %cst_6 = arith.constant 1.000000e-24 : f32
    %9 = vector.broadcast %cst_6 : f32 to vector<8x1xf32>
    %10 = arith.maximumf %8, %9 : vector<8x1xf32>
    %11 = math.rsqrt %10 : vector<8x1xf32>
    %12 = vector.broadcast %11 : vector<8x1xf32> to vector<8x128xf32>
    %13 = arith.mulf %5, %12 : vector<8x128xf32>
    %c0_7 = arith.constant 0 : index
    %c0_8 = arith.constant 0 : index
    %14 = vector.load %arg4[%c0_7, %c0_8] : memref<8x128xf32, #tpu.memory_space<vmem>>, vector<8x128xf32>
    tpu.vector_store %arg4[%c0_7, %c0_8], %13 {strides = array<i32>} : memref<8x128xf32, #tpu.memory_space<vmem>>, vector<8x128xf32>,
    return
  }
  func.func @transform_0(%arg0: i32) -> (i32, i32) {
    %c0_i32 = arith.constant 0 : i32
    %c0_i32_0 = arith.constant 0 : i32
    return %arg0, %c0_i32 : i32, i32
  }
  func.func @transform_1(%arg0: i32) -> (i32, i32) {
    %c0_i32 = arith.constant 0 : i32
    %c0_i32_0 = arith.constant 0 : i32
    %c0_i32_1 = arith.constant 0 : i32
    return %c0_i32, %c0_i32_0 : i32, i32
  }
  func.func @transform_2(%arg0: i32) -> (i32, i32) {
    %c0_i32 = arith.constant 0 : i32
    %c0_i32_0 = arith.constant 0 : i32
    %c0_i32_1 = arith.constant 0 : i32
    return %c0_i32, %c0_i32_0 : i32, i32
  }
  func.func @transform_3(%arg0: i32) -> (i32, i32) {
    %c0_i32 = arith.constant 0 : i32
    %c0_i32_0 = arith.constant 0 : i32
    return %arg0, %c0_i32 : i32, i32
  }
}

</mosaic_0001>

<bundles_post_ra>
// kernel: tpu_custom_call.1
= control target key start
LH: loop header
LB: loop body
LE: loop exit
PB: predicated region body
PF: predicated region fallthrough
CT: control target
= control target key end

     0   :  { %8 = vsyncpa [#allocation3], 0  ;;  %s330_s0 = inlined_call_operand.hbm [shape: f32[8,32], index: 0, kind: input, shape index: {}]   ;;  %s331_s1 = inlined_call_operand.hbm [shape: f32[32,128], index: 1, kind: input, shape index: {}]   ;;  %s332_s2 = inlined_call_operand.vmem [shape: f32[1,128], index: 2, kind: input, shape index: {}]   ;;  %s333_s3 = inlined_call_operand.hbm [shape: f32[8,128], index: 3, kind: output, shape index: {}]  }
   0x1   :  { %9 = vsyncpa [#allocation6], 0 }
   0x2   :  { %10 = vsyncpa [#allocation4], 0  ;;  %s256_s12 = smov [#allocation2]   ;;  %s257_s14 = smov [#allocation5]  }
   0x3   :  { %s17_s13 = sshll.u32 %s256_s12, 4  ;;  %s26_s15 = sshll.u32 %s257_s14, 4  ;;  %s18_s13 = int_to_ptr.vmem [resolvable:$true] %s17_s13  ;;  %s284_s15 = int_to_ptr.vmem [resolvable:$true] %s26_s15 }
   0x4   :  { %s184_s18 = scalar_lea.hbm %s330_s0, 128 }
   0x5   :  { %p185_p0 = scmp.ne.s32.totalorder %s330_s0, %s184_s18  ;;  %p188_p1 = scmp.lt.u32.totalorder %s184_s18, %s330_s0 }
   0x7   :  { %p190_p2 = pnand %p188_p1, %p185_p0 }
   0x9   :  { %193 = shalt.err (!%p190_p2)
}
   0xa   :  { %s194_s23 = scalar_lea.vmem %s18_s13, 128  ;;  %p199_p4 = scmp.lt.s32.totalorder %s18_s13, %s18_s13 }
   0xb   :  { %p195_p3 = scmp.ne.s32.totalorder %s18_s13, %s194_s23  ;;  %p200_p5 = scmp.lt.s32.totalorder %s194_s23, %s194_s23 }
   0xd   :  { %p201_p6 = por %p200_p5, %p199_p4 }
   0xf   :  { %p202_p7 = pnand %p201_p6, %p195_p3 }
  0x11   :  { %205 = shalt.err (!%p202_p7)
}
  0x12   :  { %20 = dma.hbm_to_vmem [thread:$0]  %s330_s0, 128, %s18_s13, [#allocation3]  }
  0x13   :  { %s206_s28 = scalar_lea.hbm %s331_s1, 512 }
  0x14   :  { %p207_p8 = scmp.ne.s32.totalorder %s331_s1, %s206_s28  ;;  %p210_p9 = scmp.lt.u32.totalorder %s206_s28, %s331_s1 }
  0x16   :  { %p212_p10 = pnand %p210_p9, %p207_p8 }
  0x18   :  { %215 = shalt.err (!%p212_p10)
}
  0x19   :  { %s216_s6 = scalar_lea.vmem %s284_s15, 512  ;;  %p221_p12 = scmp.lt.s32.totalorder %s284_s15, %s284_s15 }
  0x1a   :  { %p217_p11 = scmp.ne.s32.totalorder %s284_s15, %s216_s6  ;;  %p222_p13 = scmp.lt.s32.totalorder %s216_s6, %s216_s6 }
  0x1c   :  { %p223_p0 = por %p222_p13, %p221_p12 }
  0x1e   :  { %p224_p1 = pnand %p223_p0, %p217_p11 }
  0x20   :  { %227 = shalt.err (!%p224_p1)
}
  0x21   :  { %s258_s0 = smov 128   ;;  %s259_s7 = smov 8  }
  0x22   :  { %32 = dma.hbm_to_vmem [thread:$0]  %s331_s1, 512, %s284_s15, [#allocation6], %s258_s0, %s258_s0, %s259_s7  }
  0x23   :  { %250 = dma.done.wait [#allocation3], 128  }
  0x24   :  { %251 = vsyncadd [#allocation3], 4294967168 }
  0x25   :  { %252 = dma.done.wait [#allocation6], 512  }
  0x26   :  { %253 = vsyncadd [#allocation6], 4294966784  ;;  %v260_v0 = vmov 0.0|0.0   ;;  %vm261_vm0 = vmmov 0   ;;  %v262_v1 = vmov 0.0   ;;  %v42_v2 = vld [vmem:[#allocation5] sm:$0xff] }
  0x27   :  { %168 = vmatprep.subr.bf16.mxu0 %v260_v0  ;;  %165 = vmatprep.mubr.msk.f32.mxu0 %vm261_vm0, %v262_v1  ;;  %v43_v3 = vld [vmem:[#allocation5 + $0x8] sm:$0xff]  ;;  %v44_v4 = vld [vmem:[#allocation5 + $0x10] sm:$0xff]  ;;  %v45_v6 = vld [vmem:[#allocation5 + $0x18] sm:$0xff]  ;;  %vm53_vm1 = vcmask 261120   ;;  %s263_s11 = smov [#allocation7]  }
  0x28   :  { %v169_v5 = vpack.c.bf16 %v43_v3, %v42_v2  ;;  %v172_v7 = vpack.c.bf16 %v45_v6, %v44_v4  ;;  %v41_v8 = vld [vmem:[#allocation2] sm:$0xff]  ;;  %s140_s12 = sshll.u32 %s263_s11, 4  ;;  %s141_s12 = int_to_ptr.vmem [resolvable:$true] %s140_s12 }
  0x29   :  { %v150_v9 = vld [vmem:[%s332_s2] ss:$0 sm:$0xff]  ;;  %s228_s13 = scalar_lea.vmem %s141_s12, 128  ;;  %p233_p3 = scmp.lt.s32.totalorder %s141_s12, %s141_s12 }
  0x2a   :  { %170 = vmatpush3.bf16.msra.mxu0 %v169_v5  ;;  %p229_p2 = scmp.ne.s32.totalorder %s141_s12, %s228_s13  ;;  %p234_p4 = scmp.lt.s32.totalorder %s228_s13, %s228_s13 }
  0x2b   :  { %171 = vmatprep.subr.bf16.mxu0 %v260_v0 }
  0x2c   :  { %p235_p5 = por %p234_p4, %p233_p3 }
  0x2e   :  { %173 = vmatpush3.bf16.msra.mxu0 %v172_v7  ;;  %p236_p6 = pnand %p235_p5, %p229_p2 }
  0x31   :  { %166 = vmatmul.mubr.msk.f32.vlgmr.msra.gmra.mrb[0].mxu0 %vm53_vm1, %v41_v8 }
 0x104   :  { %v123_v10 = vpop.f32.mrb[0].mxu0 }
 0x105   :  { %v124_v11 = vadd.f32 %v150_v9, %v123_v10  ;;  %v167_v12 = vpop.f32.mrb[1].mxu0 }
 0x107   :  { %v127_v13 = vmul.f32 %v124_v11, %v124_v11 }
 0x109   :  { %128 = vadd.xlane.f32.xlu0 %v127_v13 }
 0x196   :  { %v129_v14 = vpop.xlane.xlu0 %128 }
 0x197   :  { %v130_v15 = vmax.f32 %v129_v14, 1e-24 }
 0x199   :  { %182 = vrsqrt.f32 %v130_v15 }
 0x1a3   :  { %v183_v16 = vpop.eup %182 }
 0x1a4   :  { %v132_v17 = vmul.f32 %v183_v16, %v124_v11 }
 0x1a6   :  { %133 = vst [vmem:[#allocation7] sm:$0xff] %v132_v17 }
 0x1a7   :  { %239 = shalt.err (!%p236_p6)
}
 0x1a8   :  { %s240_s15 = scalar_lea.hbm %s333_s3, 128 }
 0x1a9   :  { %p241_p7 = scmp.ne.s32.totalorder %s333_s3, %s240_s15  ;;  %p244_p8 = scmp.lt.u32.totalorder %s240_s15, %s333_s3 }
 0x1ab   :  { %p246_p9 = pnand %p244_p8, %p241_p7 }
 0x1ad   :  { %249 = shalt.err (!%p246_p9)
}
 0x1ae   :  { %143 = dma.vmem_to_hbm [thread:$0]  %s141_s12, 128, %s333_s3, [#allocation4]  }
 0x1af   :  { %254 = dma.done.wait [#allocation4], 128  }
 0x1b0   :  { %255 = vsyncadd [#allocation4], 4294967168 }
 0x1b1   :  { %147 = vsyncpa [#allocation3], 1 }
 0x1b2   :  { %148 = vsyncpa [#allocation6], 1 }
 0x1b3   :  { %149 = vsyncpa [#allocation4], 1 }

</bundles_post_ra>
